<compile_context>
chip_gen: v7x
topology: tpu7x:2x2x1
jax: 0.10.0
libtpu: 0.0.40
codegen_flags: <defaults>
</compile_context>

<pallas_src>
import functools

import jax
import jax.numpy as jnp
from jax.experimental import pallas as pl
from jax.experimental.pallas import tpu as pltpu


_MAX_TILE_B = 2048   # row-tile cap; VMEM per step stays ~1.5 MiB at f32 inputs
_SPLIT_MIN_B = 256   # above this, split batch so the grid has >= 2 steps (v7x)


def _round_up(n, m):
    return (n + m - 1) // m * m


def _lrelu(v):
    return jnp.where(v > 0, v, 0.2 * v)


def _encoder_kernel_xy(x_ref, c_ref, w1a_ref, w1b_ref, b1_ref, w3_ref, b3_ref,
                       wm_ref, bm_ref, wv_ref, bv_ref, m_ref, v_ref, *,
                       compute_dtype):
    """Fused encoder (encoder_use_y=True): concat folded into a split fc1."""
    x = x_ref[...].astype(compute_dtype)
    c = c_ref[...].astype(compute_dtype)
    # fc1 on [x | c] without materializing the concat: x @ w1a + c @ w1b + b1.
    # bf16 MXU inputs, f32 accumulation; bias + LeakyReLU in f32.
    h = (jnp.dot(x, w1a_ref[...], preferred_element_type=jnp.float32)
         + jnp.dot(c, w1b_ref[...], preferred_element_type=jnp.float32)
         + b1_ref[...])
    h = _lrelu(h).astype(compute_dtype)

    # fc3 + LeakyReLU(0.2)
    h = jnp.dot(h, w3_ref[...], preferred_element_type=jnp.float32) + b3_ref[...]
    h = _lrelu(h).astype(compute_dtype)

    # Two output heads share the resident h tile -> two small MXU dots,
    # written straight to two outputs (no fused buffer + wrapper slices).
    m_ref[...] = (jnp.dot(h, wm_ref[...], preferred_element_type=jnp.float32)
                  + bm_ref[...])
    v_ref[...] = (jnp.dot(h, wv_ref[...], preferred_element_type=jnp.float32)
                  + bv_ref[...])


def _encoder_kernel_x(x_ref, w1_ref, b1_ref, w3_ref, b3_ref,
                      wm_ref, bm_ref, wv_ref, bv_ref, m_ref, v_ref, *,
                      compute_dtype):
    """Fused encoder (encoder_use_y=False)."""
    x = x_ref[...].astype(compute_dtype)
    h = jnp.dot(x, w1_ref[...], preferred_element_type=jnp.float32) + b1_ref[...]
    h = _lrelu(h).astype(compute_dtype)
    h = jnp.dot(h, w3_ref[...], preferred_element_type=jnp.float32) + b3_ref[...]
    h = _lrelu(h).astype(compute_dtype)
    m_ref[...] = (jnp.dot(h, wm_ref[...], preferred_element_type=jnp.float32)
                  + bm_ref[...])
    v_ref[...] = (jnp.dot(h, wv_ref[...], preferred_element_type=jnp.float32)
                  + bv_ref[...])


def prepare_params(params, *, feat_dim, encoder_use_y=True,
                   compute_dtype=jnp.bfloat16):
    """One-time prep: transpose to [in, out], cast weights to the MXU dtype,
    reshape biases to [1, out] (kept f32), split fc1 for the folded concat.
    Done once outside the hot path, so encoder_forward emits no glue ops.
    """
    w1, b1, w3, b3, wm, bm, wv, bv = params
    w1t = jnp.asarray(w1).T.astype(compute_dtype)    # [in_dim, hidden]
    w3t = jnp.asarray(w3).T.astype(compute_dtype)    # [hidden, 2L]
    wmt = jnp.asarray(wm).T.astype(compute_dtype)    # [2L, L]
    wvt = jnp.asarray(wv).T.astype(compute_dtype)    # [2L, L]
    b1r = jnp.asarray(b1).reshape(1, -1).astype(jnp.float32)
    b3r = jnp.asarray(b3).reshape(1, -1).astype(jnp.float32)
    bmr = jnp.asarray(bm).reshape(1, -1).astype(jnp.float32)
    bvr = jnp.asarray(bv).reshape(1, -1).astype(jnp.float32)
    if encoder_use_y:
        w1a = w1t[:feat_dim]                         # [feat,   hidden]
        w1b = w1t[feat_dim:]                         # [latent, hidden]
        return (w1a, w1b, b1r, w3t, b3r, wmt, bmr, wvt, bvr)
    return (w1t, b1r, w3t, b3r, wmt, bmr, wvt, bvr)


def encoder_forward(x, c, prep_params, *, encoder_use_y=True,
                    compute_dtype=jnp.bfloat16):
    """Run the fused Pallas encoder. `prep_params` comes from prepare_params()."""
    B = x.shape[0]
    latent = prep_params[-1].shape[-1]               # bv is [1, latent]

    # Batch tiling (no wrapper pad; Pallas masks the ragged last block):
    #  * B <= _SPLIT_MIN_B : single full-size block (splitting tiny work only
    #    adds per-step overhead).
    #  * larger B          : ~B/2 rows per step so the "parallel" grid axis has
    #    >= 2 steps for v7x's two TensorCores, capped at _MAX_TILE_B and
    #    rounded to 8 sublanes (required when tile_b != B).
    if B <= _SPLIT_MIN_B:
        tile_b = B
    else:
        tile_b = min(_MAX_TILE_B, _round_up(pl.cdiv(B, 2), 8))
    grid = (pl.cdiv(B, tile_b),)

    def row_spec(feat):
        # Batch-blocked activations.
        return pl.BlockSpec((tile_b, feat), lambda i: (i, 0))

    def resident_spec(arr):
        # Weights / biases: same block every grid step -> stay VMEM-resident.
        return pl.BlockSpec(arr.shape, lambda i: (0, 0))

    if encoder_use_y:
        kernel = functools.partial(_encoder_kernel_xy, compute_dtype=compute_dtype)
        w1a, w1b, b1, w3, b3, wm, bm, wv, bv = prep_params
        args = (x, c, w1a, w1b, b1, w3, b3, wm, bm, wv, bv)
        in_specs = [row_spec(x.shape[1]), row_spec(c.shape[1])] + [
            resident_spec(a) for a in (w1a, w1b, b1, w3, b3, wm, bm, wv, bv)
        ]
    else:
        kernel = functools.partial(_encoder_kernel_x, compute_dtype=compute_dtype)
        w1, b1, w3, b3, wm, bm, wv, bv = prep_params
        args = (x, w1, b1, w3, b3, wm, bm, wv, bv)
        in_specs = [row_spec(x.shape[1])] + [
            resident_spec(a) for a in (w1, b1, w3, b3, wm, bm, wv, bv)
        ]

    out_spec = pl.BlockSpec((tile_b, latent), lambda i: (i, 0))
    means, log_vars = pl.pallas_call(
        kernel,
        out_shape=(jax.ShapeDtypeStruct((B, latent), jnp.float32),
                   jax.ShapeDtypeStruct((B, latent), jnp.float32)),
        grid=grid,
        in_specs=in_specs,
        out_specs=(out_spec, out_spec),
        compiler_params=pltpu.CompilerParams(
            dimension_semantics=("parallel",),  # shard batch across TCs (v7x)
        ),
    )(*args)
    return means, log_vars


def init_params(key, in_dim, hidden, latent):
    """Deterministic init matching weights_init: W ~ N(0, 0.02), b = 0.

    Shapes mirror PyTorch's nn.Linear ([out, in])."""
    k1, k3, km, kv = jax.random.split(key, 4)
    w1 = 0.02 * jax.random.normal(k1, (hidden, in_dim), jnp.float32)       # fc1
    b1 = jnp.zeros((hidden,), jnp.float32)
    w3 = 0.02 * jax.random.normal(k3, (2 * latent, hidden), jnp.float32)   # fc3
    b3 = jnp.zeros((2 * latent,), jnp.float32)
    wm = 0.02 * jax.random.normal(km, (latent, 2 * latent), jnp.float32)   # linear_means
    bm = jnp.zeros((latent,), jnp.float32)
    wv = 0.02 * jax.random.normal(kv, (latent, 2 * latent), jnp.float32)   # linear_log_var
    bv = jnp.zeros((latent,), jnp.float32)
    return (w1, b1, w3, b3, wm, bm, wv, bv)


def reference_forward(x, c, params, *, encoder_use_y=True):
    """Pure-JAX f32 reference mirroring the PyTorch forward."""
    if encoder_use_y:
        x = jnp.concatenate([x, c], axis=-1)
    w1, b1, w3, b3, wm, bm, wv, bv = params
    lrelu = lambda v: jnp.where(v > 0, v, 0.2 * v)
    h = lrelu(x @ w1.T + b1)
    h = lrelu(h @ w3.T + b3)
    return h @ wm.T + bm, h @ wv.T + bv


if __name__ == "__main__":
    # Small config: layer_sizes = [32, 64], latent_size = 16, encoder_use_y = True
    # => fc1 input dim = 32 + 16 = 48.
    B = 8
    feat_dim = 32
    hidden = 64
    latent = 16
    in_dim = feat_dim + latent  # encoder_use_y

    key = jax.random.PRNGKey(0)
    kx, kc, kp = jax.random.split(key, 3)
    x = jax.random.normal(kx, (B, feat_dim), jnp.float32)
    c = jax.random.normal(kc, (B, latent), jnp.float32)
    params = init_params(kp, in_dim, hidden, latent)

    # One-time param prep (transposes / bf16 cast / fc1 split hoisted out of
    # the hot path).
    prep = prepare_params(params, feat_dim=feat_dim, encoder_use_y=True)

    fwd = jax.jit(functools.partial(encoder_forward, encoder_use_y=True))

    # bf16 matmul inputs with f32 accumulation vs. an f32 reference: tolerances
    # are relaxed accordingly (observed error is ~1e-5 at these scales).
    ATOL, RTOL = 1e-3, 2e-2

    # Small-batch check (single full-size block).
    means, log_vars = fwd(x, c, prep)
    jax.block_until_ready((means, log_vars))
    ref_means, ref_log_vars = reference_forward(x, c, params, encoder_use_y=True)
    assert means.shape == (B, latent) and log_vars.shape == (B, latent)
    assert jnp.allclose(means, ref_means, atol=ATOL, rtol=RTOL)
    assert jnp.allclose(log_vars, ref_log_vars, atol=ATOL, rtol=RTOL)

    # Larger batch exercising the multi-step parallel grid and the ragged
    # (unpadded) last block: B=600 -> tile_b=304, grid=(2,).
    B2 = 600
    kx2, kc2 = jax.random.split(jax.random.PRNGKey(1))
    x2 = jax.random.normal(kx2, (B2, feat_dim), jnp.float32)
    c2 = jax.random.normal(kc2, (B2, latent), jnp.float32)
    m2, lv2 = fwd(x2, c2, prep)
    jax.block_until_ready((m2, lv2))
    rm2, rlv2 = reference_forward(x2, c2, params, encoder_use_y=True)
    assert m2.shape == (B2, latent) and lv2.shape == (B2, latent)
    assert jnp.allclose(m2, rm2, atol=ATOL, rtol=RTOL)
    assert jnp.allclose(lv2, rlv2, atol=ATOL, rtol=RTOL)

    print("KERNEL_OK")
</pallas_src>

<mosaic_0001>
module attributes {stable_mosaic.version = 11 : i64} {
  func.func @_encoder_kernel_xy(%arg0: i32, %arg1: memref<8x32xf32, #tpu.memory_space<vmem>>, %arg2: memref<8x16xf32, #tpu.memory_space<vmem>>, %arg3: memref<32x64xbf16, #tpu.memory_space<vmem>>, %arg4: memref<16x64xbf16, #tpu.memory_space<vmem>>, %arg5: memref<1x64xf32, #tpu.memory_space<vmem>>, %arg6: memref<64x32xbf16, #tpu.memory_space<vmem>>, %arg7: memref<1x32xf32, #tpu.memory_space<vmem>>, %arg8: memref<32x16xbf16, #tpu.memory_space<vmem>>, %arg9: memref<1x16xf32, #tpu.memory_space<vmem>>, %arg10: memref<32x16xbf16, #tpu.memory_space<vmem>>, %arg11: memref<1x16xf32, #tpu.memory_space<vmem>>, %arg12: memref<8x16xf32, #tpu.memory_space<vmem>>, %arg13: memref<8x16xf32, #tpu.memory_space<vmem>>) attributes {dimension_semantics = [#tpu.dimension_semantics<parallel>], iteration_bounds = array<i64: 1>, scalar_prefetch = 0 : i64, scratch_operands = 0 : i64, tpu.core_type = #tpu.core_type<tc>, window_params = [{transform_indices = @transform_0, window_bounds = array<i64: 8, 32>}, {transform_indices = @transform_1, window_bounds = array<i64: 8, 16>}, {pipeline_mode = #tpu.pipeline_mode<synchronous>, transform_indices = @transform_2, window_bounds = array<i64: 32, 64>}, {pipeline_mode = #tpu.pipeline_mode<synchronous>, transform_indices = @transform_3, window_bounds = array<i64: 16, 64>}, {pipeline_mode = #tpu.pipeline_mode<synchronous>, transform_indices = @transform_4, window_bounds = array<i64: 1, 64>}, {pipeline_mode = #tpu.pipeline_mode<synchronous>, transform_indices = @transform_5, window_bounds = array<i64: 64, 32>}, {pipeline_mode = #tpu.pipeline_mode<synchronous>, transform_indices = @transform_6, window_bounds = array<i64: 1, 32>}, {pipeline_mode = #tpu.pipeline_mode<synchronous>, transform_indices = @transform_7, window_bounds = array<i64: 32, 16>}, {pipeline_mode = #tpu.pipeline_mode<synchronous>, transform_indices = @transform_8, window_bounds = array<i64: 1, 16>}, {pipeline_mode = #tpu.pipeline_mode<synchronous>, transform_indices = @transform_9, window_bounds = array<i64: 32, 16>}, {pipeline_mode = #tpu.pipeline_mode<synchronous>, transform_indices = @transform_10, window_bounds = array<i64: 1, 16>}, {transform_indices = @transform_11, window_bounds = array<i64: 8, 16>}, {transform_indices = @transform_12, window_bounds = array<i64: 8, 16>}]} {
    %c0 = arith.constant 0 : index
    %c0_0 = arith.constant 0 : index
    %0 = vector.load %arg1[%c0, %c0_0] : memref<8x32xf32, #tpu.memory_space<vmem>>, vector<8x32xf32>
    %1 = arith.truncf %0 : vector<8x32xf32> to vector<8x32xbf16>
    %c0_1 = arith.constant 0 : index
    %c0_2 = arith.constant 0 : index
    %2 = vector.load %arg2[%c0_1, %c0_2] : memref<8x16xf32, #tpu.memory_space<vmem>>, vector<8x16xf32>
    %3 = arith.truncf %2 : vector<8x16xf32> to vector<8x16xbf16>
    %c0_3 = arith.constant 0 : index
    %c0_4 = arith.constant 0 : index
    %4 = vector.load %arg3[%c0_3, %c0_4] : memref<32x64xbf16, #tpu.memory_space<vmem>>, vector<32x64xbf16>
    %cst = arith.constant dense<0.000000e+00> : vector<8x64xf32>
    %5 = tpu.matmul %1, %4, %cst {dimension_numbers = #tpu.dot_dimension_numbers<[1], [0], [0], [1], [0, 0, 1, 1], [], []>} : vector<8x32xbf16>, vector<32x64xbf16>, vector<8x64xf32> -> vector<8x64xf32>
    %c0_5 = arith.constant 0 : index
    %c0_6 = arith.constant 0 : index
    %6 = vector.load %arg4[%c0_5, %c0_6] : memref<16x64xbf16, #tpu.memory_space<vmem>>, vector<16x64xbf16>
    %cst_7 = arith.constant dense<0.000000e+00> : vector<8x64xf32>
    %7 = tpu.matmul %3, %6, %cst_7 {dimension_numbers = #tpu.dot_dimension_numbers<[1], [0], [0], [1], [0, 0, 1, 1], [], []>} : vector<8x16xbf16>, vector<16x64xbf16>, vector<8x64xf32> -> vector<8x64xf32>
    %8 = arith.addf %5, %7 : vector<8x64xf32>
    %c0_8 = arith.constant 0 : index
    %c0_9 = arith.constant 0 : index
    %9 = vector.load %arg5[%c0_8, %c0_9] : memref<1x64xf32, #tpu.memory_space<vmem>>, vector<1x64xf32>
    %10 = vector.broadcast %9 : vector<1x64xf32> to vector<8x64xf32>
    %11 = arith.addf %8, %10 : vector<8x64xf32>
    %cst_10 = arith.constant 0.000000e+00 : f32
    %12 = vector.broadcast %cst_10 : f32 to vector<8x64xf32>
    %13 = arith.cmpf ogt, %11, %12 : vector<8x64xf32>
    %cst_11 = arith.constant 2.000000e-01 : f32
    %14 = vector.broadcast %cst_11 : f32 to vector<8x64xf32>
    %15 = arith.mulf %14, %11 : vector<8x64xf32>
    %16 = arith.select %13, %11, %15 : vector<8x64xi1>, vector<8x64xf32>
    %17 = arith.truncf %16 : vector<8x64xf32> to vector<8x64xbf16>
    %c0_12 = arith.constant 0 : index
    %c0_13 = arith.constant 0 : index
    %18 = vector.load %arg6[%c0_12, %c0_13] : memref<64x32xbf16, #tpu.memory_space<vmem>>, vector<64x32xbf16>
    %cst_14 = arith.constant dense<0.000000e+00> : vector<8x32xf32>
    %19 = tpu.matmul %17, %18, %cst_14 {dimension_numbers = #tpu.dot_dimension_numbers<[1], [0], [0], [1], [0, 0, 1, 1], [], []>} : vector<8x64xbf16>, vector<64x32xbf16>, vector<8x32xf32> -> vector<8x32xf32>
    %c0_15 = arith.constant 0 : index
    %c0_16 = arith.constant 0 : index
    %20 = vector.load %arg7[%c0_15, %c0_16] : memref<1x32xf32, #tpu.memory_space<vmem>>, vector<1x32xf32>
    %21 = vector.broadcast %20 : vector<1x32xf32> to vector<8x32xf32>
    %22 = arith.addf %19, %21 : vector<8x32xf32>
    %cst_17 = arith.constant 0.000000e+00 : f32
    %23 = vector.broadcast %cst_17 : f32 to vector<8x32xf32>
    %24 = arith.cmpf ogt, %22, %23 : vector<8x32xf32>
    %cst_18 = arith.constant 2.000000e-01 : f32
    %25 = vector.broadcast %cst_18 : f32 to vector<8x32xf32>
    %26 = arith.mulf %25, %22 : vector<8x32xf32>
    %27 = arith.select %24, %22, %26 : vector<8x32xi1>, vector<8x32xf32>
    %28 = arith.truncf %27 : vector<8x32xf32> to vector<8x32xbf16>
    %c0_19 = arith.constant 0 : index
    %c0_20 = arith.constant 0 : index
    %29 = vector.load %arg8[%c0_19, %c0_20] : memref<32x16xbf16, #tpu.memory_space<vmem>>, vector<32x16xbf16>
    %cst_21 = arith.constant dense<0.000000e+00> : vector<8x16xf32>
    %30 = tpu.matmul %28, %29, %cst_21 {dimension_numbers = #tpu.dot_dimension_numbers<[1], [0], [0], [1], [0, 0, 1, 1], [], []>} : vector<8x32xbf16>, vector<32x16xbf16>, vector<8x16xf32> -> vector<8x16xf32>
    %c0_22 = arith.constant 0 : index
    %c0_23 = arith.constant 0 : index
    %31 = vector.load %arg9[%c0_22, %c0_23] : memref<1x16xf32, #tpu.memory_space<vmem>>, vector<1x16xf32>
    %32 = vector.broadcast %31 : vector<1x16xf32> to vector<8x16xf32>
    %33 = arith.addf %30, %32 : vector<8x16xf32>
    %c0_24 = arith.constant 0 : index
    %c0_25 = arith.constant 0 : index
    %34 = vector.load %arg12[%c0_24, %c0_25] : memref<8x16xf32, #tpu.memory_space<vmem>>, vector<8x16xf32>
    tpu.vector_store %arg12[%c0_24, %c0_25], %33 {strides = array<i32>} : memref<8x16xf32, #tpu.memory_space<vmem>>, vector<8x16xf32>,
    %c0_26 = arith.constant 0 : index
    %c0_27 = arith.constant 0 : index
    %35 = vector.load %arg10[%c0_26, %c0_27] : memref<32x16xbf16, #tpu.memory_space<vmem>>, vector<32x16xbf16>
    %cst_28 = arith.constant dense<0.000000e+00> : vector<8x16xf32>
    %36 = tpu.matmul %28, %35, %cst_28 {dimension_numbers = #tpu.dot_dimension_numbers<[1], [0], [0], [1], [0, 0, 1, 1], [], []>} : vector<8x32xbf16>, vector<32x16xbf16>, vector<8x16xf32> -> vector<8x16xf32>
    %c0_29 = arith.constant 0 : index
    %c0_30 = arith.constant 0 : index
    %37 = vector.load %arg11[%c0_29, %c0_30] : memref<1x16xf32, #tpu.memory_space<vmem>>, vector<1x16xf32>
    %38 = vector.broadcast %37 : vector<1x16xf32> to vector<8x16xf32>
    %39 = arith.addf %36, %38 : vector<8x16xf32>
    %c0_31 = arith.constant 0 : index
    %c0_32 = arith.constant 0 : index
    %40 = vector.load %arg13[%c0_31, %c0_32] : memref<8x16xf32, #tpu.memory_space<vmem>>, vector<8x16xf32>
    tpu.vector_store %arg13[%c0_31, %c0_32], %39 {strides = array<i32>} : memref<8x16xf32, #tpu.memory_space<vmem>>, vector<8x16xf32>,
    return
  }
  func.func @transform_0(%arg0: i32) -> (i32, i32) {
    %c0_i32 = arith.constant 0 : i32
    %c0_i32_0 = arith.constant 0 : i32
    return %arg0, %c0_i32 : i32, i32
  }
  func.func @transform_1(%arg0: i32) -> (i32, i32) {
    %c0_i32 = arith.constant 0 : i32
    %c0_i32_0 = arith.constant 0 : i32
    return %arg0, %c0_i32 : i32, i32
  }
  func.func @transform_2(%arg0: i32) -> (i32, i32) {
    %c0_i32 = arith.constant 0 : i32
    %c0_i32_0 = arith.constant 0 : i32
    %c0_i32_1 = arith.constant 0 : i32
    return %c0_i32, %c0_i32_0 : i32, i32
  }
  func.func @transform_3(%arg0: i32) -> (i32, i32) {
    %c0_i32 = arith.constant 0 : i32
    %c0_i32_0 = arith.constant 0 : i32
    %c0_i32_1 = arith.constant 0 : i32
    return %c0_i32, %c0_i32_0 : i32, i32
  }
  func.func @transform_4(%arg0: i32) -> (i32, i32) {
    %c0_i32 = arith.constant 0 : i32
    %c0_i32_0 = arith.constant 0 : i32
    %c0_i32_1 = arith.constant 0 : i32
    return %c0_i32, %c0_i32_0 : i32, i32
  }
  func.func @transform_5(%arg0: i32) -> (i32, i32) {
    %c0_i32 = arith.constant 0 : i32
    %c0_i32_0 = arith.constant 0 : i32
    %c0_i32_1 = arith.constant 0 : i32
    return %c0_i32, %c0_i32_0 : i32, i32
  }
  func.func @transform_6(%arg0: i32) -> (i32, i32) {
    %c0_i32 = arith.constant 0 : i32
    %c0_i32_0 = arith.constant 0 : i32
    %c0_i32_1 = arith.constant 0 : i32
    return %c0_i32, %c0_i32_0 : i32, i32
  }
  func.func @transform_7(%arg0: i32) -> (i32, i32) {
    %c0_i32 = arith.constant 0 : i32
    %c0_i32_0 = arith.constant 0 : i32
    %c0_i32_1 = arith.constant 0 : i32
    return %c0_i32, %c0_i32_0 : i32, i32
  }
  func.func @transform_8(%arg0: i32) -> (i32, i32) {
    %c0_i32 = arith.constant 0 : i32
    %c0_i32_0 = arith.constant 0 : i32
    %c0_i32_1 = arith.constant 0 : i32
    return %c0_i32, %c0_i32_0 : i32, i32
  }
  func.func @transform_9(%arg0: i32) -> (i32, i32) {
    %c0_i32 = arith.constant 0 : i32
    %c0_i32_0 = arith.constant 0 : i32
    %c0_i32_1 = arith.constant 0 : i32
    return %c0_i32, %c0_i32_0 : i32, i32
  }
  func.func @transform_10(%arg0: i32) -> (i32, i32) {
    %c0_i32 = arith.constant 0 : i32
    %c0_i32_0 = arith.constant 0 : i32
    %c0_i32_1 = arith.constant 0 : i32
    return %c0_i32, %c0_i32_0 : i32, i32
  }
  func.func @transform_11(%arg0: i32) -> (i32, i32) {
    %c0_i32 = arith.constant 0 : i32
    %c0_i32_0 = arith.constant 0 : i32
    return %arg0, %c0_i32 : i32, i32
  }
  func.func @transform_12(%arg0: i32) -> (i32, i32) {
    %c0_i32 = arith.constant 0 : i32
    %c0_i32_0 = arith.constant 0 : i32
    return %arg0, %c0_i32 : i32, i32
  }
}

</mosaic_0001>

<bundles_post_ra>
// kernel: encoder_forward.1
= control target key start
LH: loop header
LB: loop body
LE: loop exit
PB: predicated region body
PF: predicated region fallthrough
CT: control target
= control target key end

     0   :  { %18 = vsyncpa [#allocation3], 0  ;;  %v558_v1 = vmov 0.0   ;;  %vm559_vm0 = vmmov 0   ;;  %vm59_vm1 = vcmask 130048   ;;  %vm115_vm2 = vcmask 261120   ;;  %s729_s0 = inlined_call_operand.vmem [shape: f32[8,32], index: 0, kind: input, shape index: {}]   ;;  %s730_s1 = inlined_call_operand.vmem [shape: f32[8,16], index: 1, kind: input, shape index: {}]   ;;  %s731_s2 = inlined_call_operand.vmem [shape: bf16[32,64], index: 2, kind: input, shape index: {}]   ;;  %s732_s3 = inlined_call_operand.vmem [shape: bf16[16,64], index: 3, kind: input, shape index: {}]   ;;  %s733_s4 = inlined_call_operand.vmem [shape: f32[1,64], index: 4, kind: input, shape index: {}]   ;;  %s734_s5 = inlined_call_operand.vmem [shape: bf16[64,32], index: 5, kind: input, shape index: {}]   ;;  %s735_s6 = inlined_call_operand.vmem [shape: f32[1,32], index: 6, kind: input, shape index: {}]   ;;  %s736_s7 = inlined_call_operand.vmem [shape: bf16[32,16], index: 7, kind: input, shape index: {}]   ;;  %s737_s8 = inlined_call_operand.vmem [shape: f32[1,16], index: 8, kind: input, shape index: {}]   ;;  %s738_s9 = inlined_call_operand.vmem [shape: bf16[32,16], index: 9, kind: input, shape index: {}]   ;;  %s739_s10 = inlined_call_operand.vmem [shape: f32[1,16], index: 10, kind: input, shape index: {}]   ;;  %s740_s11 = inlined_call_operand.hbm [shape: f32[8,16], index: 11, kind: output, shape index: {0}]   ;;  %s741_s12 = inlined_call_operand.hbm [shape: f32[8,16], index: 12, kind: output, shape index: {1}]  }
   0x1   :  { %v499_v0 = vld [vmem:[%s731_s2] sm:$0xff]   ;;  %459 = vmatprep.subr.bf16.mxu1 %v558_v1  ;;  %453 = vmatprep.subr.bf16.mxu0 %v558_v1  ;;  %v501_v5 = vld [vmem:[%s731_s2 + $0x8] sm:$0xff]  }
   0x2   :  { %v500_v2 = vld [vmem:[%s732_s3] sm:$0xff]   ;;  %460 = vmatpush3.bf16.msra.mxu1 %v499_v0  ;;  %455 = vmatprep.mubr.msk.bf16.mxu0 %vm559_vm0, %v558_v1 }
   0x3   :  { %v45_v3 = vld [vmem:[%s730_s1] sm:$0xff]  ;;  %454 = vmatpush3.bf16.msra.mxu0 %v500_v2  ;;  %461 = vmatprep.subr.bf16.mxu1 %v558_v1 }
   0x4   :  { %v46_v4 = vpack.c.bf16 %v45_v3, %v45_v3  ;;  %v43_v6 = vld [vmem:[%s729_s0] sm:$0xff]  ;;  %463 = vmatprep.mubr.msk.bf16.mxu1 %vm559_vm0, %v558_v1  ;;  %467 = vmatprep.subr.bf16.mxu0 %v558_v1 }
   0x5   :  { %v502_v7 = vld [vmem:[%s734_s5] sm:$0xff]   ;;  %v44_v8 = vpack.c.bf16 %v43_v6, %v43_v6 }
   0x6   :  { %456 = vmatmul.mubr.msk.bf16.vlgmr.msra.gmra.mrb[0].mxu0 %vm59_vm1, %v46_v4  ;;  %462 = vmatpush3.bf16.msra.mxu1 %v501_v5 }
   0x7   :  { %468 = vmatpush3.bf16.msra.mxu0 %v502_v7  ;;  %475 = vmatprep.mubr.msk.bf16.mxu0 %vm559_vm0, %v558_v1 }
   0x8   :  { %469 = vmatprep.subr.bf16.mxu0 %v558_v1  ;;  %479 = vmatprep.subr.bf16.mxu1 %v558_v1 }
   0x9   :  { %464 = vmatmul.mubr.msk.bf16.vlgmr.msra.gmra.mrb[0].mxu1 %vm115_vm2, %v44_v8 }
   0xa   :  { %19 = vsyncpa [#allocation5], 0  ;;  %483 = vmatprep.mubr.msk.bf16.mxu1 %vm559_vm0, %v558_v1  ;;  %v503_v9 = vld [vmem:[%s734_s5 + $0x8] sm:$0xff]   ;;  %v504_v10 = vld [vmem:[%s734_s5 + $0x10] sm:$0xff]   ;;  %vm210_vm4 = vcmask 523264   ;;  %s560_s27 = smov [#allocation2]  }
   0xb   :  { %470 = vmatpush3.bf16.msra.mxu0 %v503_v9  ;;  %v505_v11 = vld [vmem:[%s734_s5 + $0x18] sm:$0xff]   ;;  %v422_v17 = vld [vmem:[%s733_s4] ss:$0 sm:$0xff]  ;;  %v507_v27 = vld [vmem:[%s736_s7 + $0x8] sm:$0xff]   ;;  %s395_s28 = sshll.u32 %s560_s27, 4  ;;  %s396_s28 = int_to_ptr.vmem [resolvable:$true] %s395_s28 }
   0xc   :  { %471 = vmatprep.subr.bf16.mxu0 %v558_v1  ;;  %v506_v26 = vld [vmem:[%s736_s7] sm:$0xff]   ;;  %v509_v38 = vld [vmem:[%s738_s9 + $0x8] sm:$0xff]   ;;  %p515_p1 = scmp.lt.s32.totalorder %s396_s28, %s396_s28 }
   0xd   :  { %480 = vmatpush3.bf16.msra.mxu1 %v506_v26  ;;  %v423_v28 = vld [vmem:[%s735_s6] ss:$0 sm:$0xff] }
   0xe   :  { %481 = vmatprep.subr.bf16.mxu1 %v558_v1  ;;  %v508_v36 = vld [vmem:[%s738_s9] sm:$0xff]   ;;  %s510_s9 = scalar_lea.vmem %s396_s28, 128 }
   0xf   :  { %472 = vmatpush3.bf16.msra.mxu0 %v504_v10  ;;  %v429_v39 = vld [vmem:[%s737_s8] ss:$0 sm:$0xff]  ;;  %p511_p0 = scmp.ne.s32.totalorder %s396_s28, %s510_s9  ;;  %p516_p2 = scmp.lt.s32.totalorder %s510_s9, %s510_s9 }
  0x10   :  { %473 = vmatprep.subr.bf16.mxu0 %v558_v1 }
  0x11   :  { %482 = vmatpush3.bf16.msra.mxu1 %v507_v27  ;;  %p517_p3 = por %p516_p2, %p515_p1 }
  0x12   :  { %487 = vmatprep.subr.bf16.mxu1 %v558_v1 }
  0x13   :  { %474 = vmatpush3.bf16.msra.mxu0 %v505_v11  ;;  %p518_p4 = pnand %p517_p3, %p511_p0 }
  0xd9   :  { %v97_v12 = vpop.f32.mrb[0].mxu0 }
  0xda   :  { %v457_v13 = vpop.f32.mrb[1].mxu0 }
  0xdb   :  { %v100_v14 = vpop.f32.mrb[2].mxu0 }
  0xdc   :  { %v458_v15 = vpop.f32.mrb[3].mxu0  ;;  %v153_v16 = vpop.f32.mrb[0].mxu1 }
  0xdd   :  { %v154_v18 = vadd.f32 %v153_v16, %v97_v12  ;;  %v465_v19 = vpop.f32.mrb[1].mxu1 }
  0xde   :  { %v156_v20 = vpop.f32.mrb[2].mxu1 }
  0xdf   :  { %v166_v21 = vadd.f32 %v422_v17, %v154_v18  ;;  %v466_v22 = vpop.f32.mrb[3].mxu1 }
  0xe1   :  { %vm167_vm3 = vcmp.gt.f32.partialorder %v166_v21, 0.0  ;;  %v168_v23 = vmul.f32 0.2, %v166_v21 }
  0xe3   :  { %v169_v24 = vsel %vm167_vm3, %v166_v21, %v168_v23 }
  0xe4   :  { %v170_v25 = vpack.c.bf16 %v169_v24, %v169_v24 }
  0xe6   :  { %476 = vmatmul.mubr.msk.bf16.vlgmr.msra.gmra.mrb[4].mxu0 %vm210_vm4, %v170_v25 }
 0x1b9   :  { %v248_v29 = vpop.f32.mrb[4].mxu0 }
 0x1ba   :  { %v249_v30 = vadd.f32 %v423_v28, %v248_v29  ;;  %v477_v31 = vpop.f32.mrb[5].mxu0 }
 0x1bb   :  { %v251_v32 = vpop.f32.mrb[6].mxu0 }
 0x1bc   :  { %vm254_vm5 = vcmp.gt.f32.partialorder %v249_v30, 0.0  ;;  %v255_v33 = vmul.f32 0.2, %v249_v30  ;;  %v478_v34 = vpop.f32.mrb[7].mxu0 }
 0x1be   :  { %v256_v35 = vsel %vm254_vm5, %v249_v30, %v255_v33 }
 0x1bf   :  { %v257_v37 = vpack.c.bf16 %v256_v35, %v256_v35 }
 0x1c1   :  { %484 = vmatmul.mubr.msk.bf16.vlgmr.msra.gmra.mrb[4].mxu1 %vm115_vm2, %v257_v37 }
 0x1c2   :  { %488 = vmatpush3.bf16.msra.mxu1 %v508_v36  ;;  %491 = vmatprep.mubr.msk.bf16.mxu1 %vm559_vm0, %v558_v1 }
 0x1c3   :  { %489 = vmatprep.subr.bf16.mxu1 %v558_v1 }
 0x1c6   :  { %490 = vmatpush3.bf16.msra.mxu1 %v509_v38 }
 0x1c9   :  { %492 = vmatmul.mubr.msk.bf16.vlgmr.msra.gmra.mrb[8].mxu1 %vm115_vm2, %v257_v37 }
 0x294   :  { %v318_v40 = vpop.f32.mrb[4].mxu1 }
 0x295   :  { %v319_v41 = vadd.f32 %v429_v39, %v318_v40  ;;  %v485_v42 = vpop.f32.mrb[5].mxu1 }
 0x296   :  { %v321_v43 = vpop.f32.mrb[6].mxu1 }
 0x297   :  { %324 = vst.msk [vmem:[#allocation2] sm:$0xff] %vm59_vm1, %v319_v41  ;;  %v486_v44 = vpop.f32.mrb[7].mxu1 }
 0x298   :  { %521 = shalt.err (!%p518_p4)
}
 0x299   :  { %s522_s8 = scalar_lea.hbm %s740_s11, 128 }
 0x29a   :  { %p523_p5 = scmp.ne.s32.totalorder %s740_s11, %s522_s8  ;;  %p526_p6 = scmp.lt.u32.totalorder %s522_s8, %s740_s11 }
 0x29c   :  { %p528_p7 = pnand %p526_p6, %p523_p5 }
 0x29e   :  { %531 = shalt.err (!%p528_p7)
}
 0x29f   :  { %398 = dma.vmem_to_hbm [thread:$0]  %s396_s28, 128, %s740_s11, [#allocation3]   ;;  %v433_v45 = vld [vmem:[%s739_s10] ss:$0 sm:$0xff]  ;;  %v382_v46 = vpop.f32.mrb[8].mxu1 }
 0x2a0   :  { %s561_s17 = smov [#allocation4]   ;;  %v383_v47 = vadd.f32 %v433_v45, %v382_v46  ;;  %v493_v48 = vpop.f32.mrb[9].mxu1 }
 0x2a1   :  { %s405_s18 = sshll.u32 %s561_s17, 4  ;;  %v385_v49 = vpop.f32.mrb[10].mxu1  ;;  %s406_s18 = int_to_ptr.vmem [resolvable:$true] %s405_s18 }
 0x2a2   :  { %388 = vst.msk [vmem:[#allocation4] sm:$0xff] %vm59_vm1, %v383_v47  ;;  %v494_v50 = vpop.f32.mrb[11].mxu1  ;;  %s532_s5 = scalar_lea.vmem %s406_s18, 128  ;;  %p537_p9 = scmp.lt.s32.totalorder %s406_s18, %s406_s18 }
 0x2a3   :  { %p533_p8 = scmp.ne.s32.totalorder %s406_s18, %s532_s5  ;;  %p538_p10 = scmp.lt.s32.totalorder %s532_s5, %s532_s5 }
 0x2a5   :  { %p539_p11 = por %p538_p10, %p537_p9 }
 0x2a7   :  { %p540_p12 = pnand %p539_p11, %p533_p8 }
 0x2a9   :  { %543 = shalt.err (!%p540_p12)
}
 0x2aa   :  { %s544_s10 = scalar_lea.hbm %s741_s12, 128 }
 0x2ab   :  { %p545_p13 = scmp.ne.s32.totalorder %s741_s12, %s544_s10  ;;  %p548_p0 = scmp.lt.u32.totalorder %s544_s10, %s741_s12 }
 0x2ad   :  { %p550_p1 = pnand %p548_p0, %p545_p13 }
 0x2af   :  { %553 = shalt.err (!%p550_p1)
}
 0x2b0   :  { %408 = dma.vmem_to_hbm [thread:$0]  %s406_s18, 128, %s741_s12, [#allocation5]  }
 0x2b1   :  { %554 = dma.done.wait [#allocation3], 128  }
 0x2b2   :  { %555 = vsyncadd [#allocation3], 4294967168 }
 0x2b3   :  { %556 = dma.done.wait [#allocation5], 128  }
 0x2b4   :  { %557 = vsyncadd [#allocation5], 4294967168 }
 0x2b5   :  { %415 = vsyncpa [#allocation3], 1 }
 0x2b6   :  { %416 = vsyncpa [#allocation5], 1 }

</bundles_post_ra>
